<compile_context>
chip_gen: v7x
topology: tpu7x:2x2x1
jax: 0.10.0
libtpu: 0.0.40
codegen_flags: <defaults>
</compile_context>

<pallas_src>
import functools
import math

import jax
import jax.numpy as jnp
from jax.experimental import pallas as pl
from jax.experimental.pallas import tpu as pltpu


def _round_up(a, b):
    return (a + b - 1) // b * b


def _cdiv(a, b):
    return -(-a // b)


def _label_smoothing_kernel(tgt_ref, x_ref, o_ref,
                            m_ref, l_ref, sx_ref, xt_ref, xp_ref,
                            *, vocab_size, tile_v, valid_last, needs_mask,
                            padding_idx, confidence, eps, const_term):
    j = pl.program_id(1)
    last_j = pl.num_programs(1) - 1

    @pl.when(j == 0)
    def _init():
        m_ref[...] = jnp.full(m_ref.shape, -1e30, dtype=m_ref.dtype)
        l_ref[...] = jnp.zeros_like(l_ref)
        sx_ref[...] = jnp.zeros_like(sx_ref)
        xt_ref[...] = jnp.zeros_like(xt_ref)
        xp_ref[...] = jnp.zeros_like(xp_ref)

    xb = x_ref[...].astype(jnp.float32)          # (TN, TV)
    tgt = tgt_ref[...]                           # (TN, 1) int32

    # Loop-invariant block-local iota; shift the comparands, not the iota.
    col_local = jax.lax.broadcasted_iota(jnp.int32, xb.shape, 1)
    tgt_local = tgt - j * tile_v                 # (TN, 1)

    def _accumulate(x_msk, x_zero):
        # Online (streaming) logsumexp + running sums along the vocab axis.
        m_prev = m_ref[...]
        m_new = jnp.maximum(m_prev, jnp.max(x_msk, axis=-1, keepdims=True))
        l_ref[...] = (l_ref[...] * jnp.exp(m_prev - m_new)
                      + jnp.sum(jnp.exp(x_msk - m_new), axis=-1, keepdims=True))
        m_ref[...] = m_new
        sx_ref[...] += jnp.sum(x_zero, axis=-1, keepdims=True)
        xt_ref[...] += jnp.sum(jnp.where(col_local == tgt_local, x_zero, 0.0),
                               axis=-1, keepdims=True)

    if needs_mask:
        # Only the last vocab tile overhangs V: interior tiles skip the
        # validity compare/selects (kernel is VPU-slot-bound on v6e/v7x).
        @pl.when(j != last_j)
        def _interior():
            _accumulate(xb, xb)

        @pl.when(j == last_j)
        def _edge():
            valid = col_local < valid_last       # valid_last is static
            _accumulate(jnp.where(valid, xb, jnp.float32(-1e30)),
                        jnp.where(valid, xb, jnp.float32(0.0)))
    else:
        _accumulate(xb, xb)

    # padding_idx is a compile-time constant: its logit lives in exactly one
    # vocab tile -> static slice there instead of a per-tile compare + reduce.
    @pl.when(j == padding_idx // tile_v)
    def _grab_pad_col():
        p = padding_idx % tile_v
        xp_ref[...] = xb[:, p:p + 1]

    @pl.when(j == last_j)
    def _finalize():
        lse = m_ref[...] + jnp.log(l_ref[...])                 # (TN, 1)
        log_p_t = xt_ref[...] - lse
        log_p_pad = xp_ref[...] - lse
        sum_log_p = sx_ref[...] - jnp.float32(vocab_size) * lse
        cross = (eps * (sum_log_p - log_p_t - log_p_pad)
                 + confidence * log_p_t)
        row_loss = jnp.where(tgt != padding_idx, const_term - cross, 0.0)
        o_ref[...] = row_loss.astype(o_ref.dtype)


def label_smoothing_loss(x, target, *, size, padding_idx=0, smoothing=0.1,
                         tile_rows=256, tile_vocab=4096):
    """x: [N, V] logits (f32 or bf16), target: [N] int labels -> scalar loss."""
    N, V = x.shape
    assert V == size, f"vocab mismatch: {V} != {size}"
    assert size > 2, "label smoothing requires vocab size > 2"

    confidence = 1.0 - smoothing
    eps = smoothing / (size - 2)
    const_term = 0.0                      # sum_v q_v*log(q_v) per real row
    if eps > 0.0:
        const_term += (size - 2) * eps * math.log(eps)
    if confidence > 0.0:
        const_term += confidence * math.log(confidence)

    # Dtype-aware minimum sublane tile (f32:8, bf16/f16:16, int8/fp8:32).
    min_rows = {4: 8, 2: 16, 1: 32}[jnp.dtype(x.dtype).itemsize]

    # Row tiles: at least 2 when N allows so the "parallel" axis can feed both
    # v7x TensorCores; never below the dtype minimum.
    tn = min(_round_up(tile_rows, min_rows),
             max(min_rows, _round_up(_cdiv(N, 2), min_rows)))
    n_pad = _round_up(N, tn)

    # Vocab tiles: lane-dense (multiple of 128); if the whole (128-rounded)
    # vocab fits in one tile, use an exact-width block (== array dim) so no
    # masking is needed at all.
    tile_vocab = _round_up(tile_vocab, 128)
    if _round_up(V, 128) <= tile_vocab:
        tv = V
    else:
        tv = tile_vocab
    v_tiles = _cdiv(V, tv)
    valid_last = V - (v_tiles - 1) * tv
    needs_mask = valid_last != tv

    # Only the cheap target vector is padded; logits stay unpadded. Rows >= N
    # read undefined data but their padded target is padding_idx -> loss 0.
    tgt_p = target.astype(jnp.int32)
    if n_pad != N:
        tgt_p = jnp.pad(tgt_p, (0, n_pad - N), constant_values=padding_idx)
    tgt_p = tgt_p.reshape(n_pad, 1)

    kernel = functools.partial(
        _label_smoothing_kernel,
        vocab_size=V, tile_v=tv, valid_last=valid_last, needs_mask=needs_mask,
        padding_idx=padding_idx, confidence=float(confidence),
        eps=float(eps), const_term=float(const_term))

    row_losses = pl.pallas_call(
        kernel,
        out_shape=jax.ShapeDtypeStruct((n_pad, 1), jnp.float32),
        grid_spec=pltpu.PrefetchScalarGridSpec(
            num_scalar_prefetch=0,
            grid=(n_pad // tn, v_tiles),
            in_specs=[
                pl.BlockSpec((tn, 1), lambda i, j: (i, 0)),     # targets
                pl.BlockSpec((tn, tv), lambda i, j: (i, j)),    # logits
            ],
            out_specs=pl.BlockSpec((tn, 1), lambda i, j: (i, 0)),
            scratch_shapes=[pltpu.VMEM((tn, 1), jnp.float32)] * 5,
        ),
        compiler_params=pltpu.CompilerParams(
            # rows independent -> megacore-shardable; vocab is the reduction.
            dimension_semantics=("parallel", "arbitrary"),
            # double-buffered (tn, tv) f32 blocks stay well under v7x's 64 MiB.
            vmem_limit_bytes=40 * 1024 * 1024,
        ),
    )(tgt_p, x)

    # KLDivLoss(reduction='batchmean') divides by x.size(0).
    return jnp.sum(row_losses) / jnp.float32(N)


def _reference_loss(x, target, *, size, padding_idx=0, smoothing=0.1):
    """Pure-JAX mirror of the PyTorch module (for checking)."""
    N, V = x.shape
    confidence = 1.0 - smoothing
    true_dist = jnp.full((N, V), smoothing / (size - 2), dtype=jnp.float32)
    true_dist = true_dist.at[jnp.arange(N), target].set(confidence)
    true_dist = true_dist.at[:, padding_idx].set(0.0)
    true_dist = jnp.where((target == padding_idx)[:, None], 0.0, true_dist)
    log_p = jax.nn.log_softmax(x.astype(jnp.float32), axis=1)
    kl = jnp.where(true_dist > 0.0,
                   true_dist * (jnp.log(true_dist) - log_p), 0.0)
    return jnp.sum(kl) / N


if __name__ == "__main__":
    key = jax.random.PRNGKey(0)
    k1, k2, k3, k4 = jax.random.split(key, 4)

    # Case 1: batch=2, seq=8, vocab=32, f32 logits, one padding-target row.
    vocab1, N1 = 32, 2 * 8
    x1 = jax.random.normal(k1, (N1, vocab1), dtype=jnp.float32)
    t1 = jax.random.randint(k2, (N1,), 0, vocab1, dtype=jnp.int32).at[3].set(0)
    out1 = jax.block_until_ready(
        label_smoothing_loss(x1, t1, size=vocab1, padding_idx=0, smoothing=0.1))
    ref1 = _reference_loss(x1, t1, size=vocab1, padding_idx=0, smoothing=0.1)
    assert out1.shape == ()
    assert jnp.allclose(out1, ref1, atol=1e-4, rtol=1e-4), (float(out1), float(ref1))

    # Case 2: multi vocab-tile + unaligned vocab (V=300, tv=128) + bf16 logits
    # + row remainder (N=24, tn=16): exercises the streaming logsumexp (j>0),
    # the masked last vocab tile, and the unpadded-logits row path.
    vocab2, N2 = 300, 24
    x2 = jax.random.normal(k3, (N2, vocab2), dtype=jnp.float32).astype(jnp.bfloat16)
    t2 = jax.random.randint(k4, (N2,), 0, vocab2, dtype=jnp.int32).at[5].set(0)
    out2 = jax.block_until_ready(
        label_smoothing_loss(x2, t2, size=vocab2, padding_idx=0, smoothing=0.1,
                             tile_rows=16, tile_vocab=128))
    ref2 = _reference_loss(x2, t2, size=vocab2, padding_idx=0, smoothing=0.1)
    assert jnp.allclose(out2, ref2, atol=2e-3, rtol=2e-3), (float(out2), float(ref2))

    print("KERNEL_OK")
</pallas_src>

<mosaic_0001>
module attributes {stable_mosaic.version = 11 : i64} {
  func.func @_label_smoothing_kernel(%arg0: i32, %arg1: i32, %arg2: memref<8x1xi32, #tpu.memory_space<vmem>>, %arg3: memref<8x32xf32, #tpu.memory_space<vmem>>, %arg4: memref<8x1xf32, #tpu.memory_space<vmem>>, %arg5: memref<8x1xf32, #tpu.memory_space<vmem>>, %arg6: memref<8x1xf32, #tpu.memory_space<vmem>>, %arg7: memref<8x1xf32, #tpu.memory_space<vmem>>, %arg8: memref<8x1xf32, #tpu.memory_space<vmem>>, %arg9: memref<8x1xf32, #tpu.memory_space<vmem>>) attributes {dimension_semantics = [#tpu.dimension_semantics<parallel>, #tpu.dimension_semantics<arbitrary>], iteration_bounds = array<i64: 2, 1>, scalar_prefetch = 0 : i64, scratch_operands = 5 : i64, tpu.core_type = #tpu.core_type<tc>, window_params = [{transform_indices = @transform_0, window_bounds = array<i64: 8, 1>}, {transform_indices = @transform_1, window_bounds = array<i64: 8, 32>}, {transform_indices = @transform_2, window_bounds = array<i64: 8, 1>}]} {
    %c0_i32 = arith.constant 0 : i32
    %0 = arith.cmpi eq, %arg1, %c0_i32 : i32
    %1 = arith.extui %0 : i1 to i32
    %c0_i32_0 = arith.constant 0 : i32
    %2 = arith.cmpi ne, %1, %c0_i32_0 : i32
    scf.if %2 {
      %cst_28 = arith.constant -1.000000e+30 : f32
      %45 = vector.broadcast %cst_28 : f32 to vector<8x1xf32>
      %c0_29 = arith.constant 0 : index
      %c0_30 = arith.constant 0 : index
      %46 = vector.load %arg5[%c0_29, %c0_30] : memref<8x1xf32, #tpu.memory_space<vmem>>, vector<8x1xf32>
      tpu.vector_store %arg5[%c0_29, %c0_30], %45 {strides = array<i32>} : memref<8x1xf32, #tpu.memory_space<vmem>>, vector<8x1xf32>,
      %cst_31 = arith.constant 0.000000e+00 : f32
      %47 = vector.broadcast %cst_31 : f32 to vector<8x1xf32>
      %c0_32 = arith.constant 0 : index
      %c0_33 = arith.constant 0 : index
      %48 = vector.load %arg6[%c0_32, %c0_33] : memref<8x1xf32, #tpu.memory_space<vmem>>, vector<8x1xf32>
      tpu.vector_store %arg6[%c0_32, %c0_33], %47 {strides = array<i32>} : memref<8x1xf32, #tpu.memory_space<vmem>>, vector<8x1xf32>,
      %cst_34 = arith.constant 0.000000e+00 : f32
      %49 = vector.broadcast %cst_34 : f32 to vector<8x1xf32>
      %c0_35 = arith.constant 0 : index
      %c0_36 = arith.constant 0 : index
      %50 = vector.load %arg7[%c0_35, %c0_36] : memref<8x1xf32, #tpu.memory_space<vmem>>, vector<8x1xf32>
      tpu.vector_store %arg7[%c0_35, %c0_36], %49 {strides = array<i32>} : memref<8x1xf32, #tpu.memory_space<vmem>>, vector<8x1xf32>,
      %cst_37 = arith.constant 0.000000e+00 : f32
      %51 = vector.broadcast %cst_37 : f32 to vector<8x1xf32>
      %c0_38 = arith.constant 0 : index
      %c0_39 = arith.constant 0 : index
      %52 = vector.load %arg8[%c0_38, %c0_39] : memref<8x1xf32, #tpu.memory_space<vmem>>, vector<8x1xf32>
      tpu.vector_store %arg8[%c0_38, %c0_39], %51 {strides = array<i32>} : memref<8x1xf32, #tpu.memory_space<vmem>>, vector<8x1xf32>,
      %cst_40 = arith.constant 0.000000e+00 : f32
      %53 = vector.broadcast %cst_40 : f32 to vector<8x1xf32>
      %c0_41 = arith.constant 0 : index
      %c0_42 = arith.constant 0 : index
      %54 = vector.load %arg9[%c0_41, %c0_42] : memref<8x1xf32, #tpu.memory_space<vmem>>, vector<8x1xf32>
      tpu.vector_store %arg9[%c0_41, %c0_42], %53 {strides = array<i32>} : memref<8x1xf32, #tpu.memory_space<vmem>>, vector<8x1xf32>,
    } else {
    }
    %c0 = arith.constant 0 : index
    %c0_1 = arith.constant 0 : index
    %3 = vector.load %arg3[%c0, %c0_1] : memref<8x32xf32, #tpu.memory_space<vmem>>, vector<8x32xf32>
    %c0_2 = arith.constant 0 : index
    %c0_3 = arith.constant 0 : index
    %4 = vector.load %arg2[%c0_2, %c0_3] : memref<8x1xi32, #tpu.memory_space<vmem>>, vector<8x1xi32>
    %5 = tpu.iota {dimensions = array<i32: 1>} : vector<8x32xi32>
    %c32_i32 = arith.constant 32 : i32
    %6 = arith.muli %arg1, %c32_i32 : i32
    %7 = vector.broadcast %6 : i32 to vector<8x1xi32>
    %8 = arith.subi %4, %7 : vector<8x1xi32>
    %c0_4 = arith.constant 0 : index
    %c0_5 = arith.constant 0 : index
    %9 = vector.load %arg5[%c0_4, %c0_5] : memref<8x1xf32, #tpu.memory_space<vmem>>, vector<8x1xf32>
    %cst = arith.constant dense<0xFF800000> : vector<8xf32>
    %10 = vector.multi_reduction <maximumf>, %3, %cst [1] : vector<8x32xf32> to vector<8xf32>
    %11 = vector.shape_cast %10 : vector<8xf32> to vector<8x1xf32>
    %12 = arith.maximumf %9, %11 : vector<8x1xf32>
    %c0_6 = arith.constant 0 : index
    %c0_7 = arith.constant 0 : index
    %13 = vector.load %arg6[%c0_6, %c0_7] : memref<8x1xf32, #tpu.memory_space<vmem>>, vector<8x1xf32>
    %14 = arith.subf %9, %12 : vector<8x1xf32>
    %15 = math.exp %14 : vector<8x1xf32>
    %16 = arith.mulf %13, %15 : vector<8x1xf32>
    %17 = vector.broadcast %12 : vector<8x1xf32> to vector<8x32xf32>
    %18 = arith.subf %3, %17 : vector<8x32xf32>
    %19 = math.exp %18 : vector<8x32xf32>
    %cst_8 = arith.constant dense<0.000000e+00> : vector<8xf32>
    %20 = vector.multi_reduction <add>, %19, %cst_8 [1] : vector<8x32xf32> to vector<8xf32>
    %21 = vector.shape_cast %20 : vector<8xf32> to vector<8x1xf32>
    %22 = arith.addf %16, %21 : vector<8x1xf32>
    %c0_9 = arith.constant 0 : index
    %c0_10 = arith.constant 0 : index
    %23 = vector.load %arg6[%c0_9, %c0_10] : memref<8x1xf32, #tpu.memory_space<vmem>>, vector<8x1xf32>
    tpu.vector_store %arg6[%c0_9, %c0_10], %22 {strides = array<i32>} : memref<8x1xf32, #tpu.memory_space<vmem>>, vector<8x1xf32>,
    %c0_11 = arith.constant 0 : index
    %c0_12 = arith.constant 0 : index
    %24 = vector.load %arg5[%c0_11, %c0_12] : memref<8x1xf32, #tpu.memory_space<vmem>>, vector<8x1xf32>
    tpu.vector_store %arg5[%c0_11, %c0_12], %12 {strides = array<i32>} : memref<8x1xf32, #tpu.memory_space<vmem>>, vector<8x1xf32>,
    %c0_13 = arith.constant 0 : index
    %c0_14 = arith.constant 0 : index
    %25 = vector.load %arg7[%c0_13, %c0_14] : memref<8x1xf32, #tpu.memory_space<vmem>>, vector<8x1xf32>
    %cst_15 = arith.constant dense<0.000000e+00> : vector<8xf32>
    %26 = vector.multi_reduction <add>, %3, %cst_15 [1] : vector<8x32xf32> to vector<8xf32>
    %27 = vector.shape_cast %26 : vector<8xf32> to vector<8x1xf32>
    %28 = arith.addf %25, %27 : vector<8x1xf32>
    %c0_16 = arith.constant 0 : index
    %c0_17 = arith.constant 0 : index
    %29 = vector.load %arg7[%c0_16, %c0_17] : memref<8x1xf32, #tpu.memory_space<vmem>>, vector<8x1xf32>
    tpu.vector_store %arg7[%c0_16, %c0_17], %28 {strides = array<i32>} : memref<8x1xf32, #tpu.memory_space<vmem>>, vector<8x1xf32>,
    %c0_18 = arith.constant 0 : index
    %c0_19 = arith.constant 0 : index
    %30 = vector.load %arg8[%c0_18, %c0_19] : memref<8x1xf32, #tpu.memory_space<vmem>>, vector<8x1xf32>
    %31 = vector.broadcast %8 : vector<8x1xi32> to vector<8x32xi32>
    %32 = arith.cmpi eq, %5, %31 : vector<8x32xi32>
    %cst_20 = arith.constant 0.000000e+00 : f32
    %33 = vector.broadcast %cst_20 : f32 to vector<8x32xf32>
    %34 = arith.select %32, %3, %33 : vector<8x32xi1>, vector<8x32xf32>
    %cst_21 = arith.constant dense<0.000000e+00> : vector<8xf32>
    %35 = vector.multi_reduction <add>, %34, %cst_21 [1] : vector<8x32xf32> to vector<8xf32>
    %36 = vector.shape_cast %35 : vector<8xf32> to vector<8x1xf32>
    %37 = arith.addf %30, %36 : vector<8x1xf32>
    %c0_22 = arith.constant 0 : index
    %c0_23 = arith.constant 0 : index
    %38 = vector.load %arg8[%c0_22, %c0_23] : memref<8x1xf32, #tpu.memory_space<vmem>>, vector<8x1xf32>
    tpu.vector_store %arg8[%c0_22, %c0_23], %37 {strides = array<i32>} : memref<8x1xf32, #tpu.memory_space<vmem>>, vector<8x1xf32>,
    %c0_i32_24 = arith.constant 0 : i32
    %39 = arith.cmpi eq, %arg1, %c0_i32_24 : i32
    %40 = arith.extui %39 : i1 to i32
    %c0_i32_25 = arith.constant 0 : i32
    %41 = arith.cmpi ne, %40, %c0_i32_25 : i32
    scf.if %41 {
      %45 = vector.extract_strided_slice %3 {offsets = [0, 0], sizes = [8, 1], strides = [1, 1]} : vector<8x32xf32> to vector<8x1xf32>
      %c0_28 = arith.constant 0 : index
      %c0_29 = arith.constant 0 : index
      %46 = vector.load %arg9[%c0_28, %c0_29] : memref<8x1xf32, #tpu.memory_space<vmem>>, vector<8x1xf32>
      tpu.vector_store %arg9[%c0_28, %c0_29], %45 {strides = array<i32>} : memref<8x1xf32, #tpu.memory_space<vmem>>, vector<8x1xf32>,
    } else {
    }
    %c0_i32_26 = arith.constant 0 : i32
    %42 = arith.cmpi eq, %arg1, %c0_i32_26 : i32
    %43 = arith.extui %42 : i1 to i32
    %c0_i32_27 = arith.constant 0 : i32
    %44 = arith.cmpi ne, %43, %c0_i32_27 : i32
    scf.if %44 {
      %c0_28 = arith.constant 0 : index
      %c0_29 = arith.constant 0 : index
      %45 = vector.load %arg5[%c0_28, %c0_29] : memref<8x1xf32, #tpu.memory_space<vmem>>, vector<8x1xf32>
      %c0_30 = arith.constant 0 : index
      %c0_31 = arith.constant 0 : index
      %46 = vector.load %arg6[%c0_30, %c0_31] : memref<8x1xf32, #tpu.memory_space<vmem>>, vector<8x1xf32>
      %47 = math.log %46 : vector<8x1xf32>
      %48 = arith.addf %45, %47 : vector<8x1xf32>
      %c0_32 = arith.constant 0 : index
      %c0_33 = arith.constant 0 : index
      %49 = vector.load %arg8[%c0_32, %c0_33] : memref<8x1xf32, #tpu.memory_space<vmem>>, vector<8x1xf32>
      %50 = arith.subf %49, %48 : vector<8x1xf32>
      %c0_34 = arith.constant 0 : index
      %c0_35 = arith.constant 0 : index
      %51 = vector.load %arg9[%c0_34, %c0_35] : memref<8x1xf32, #tpu.memory_space<vmem>>, vector<8x1xf32>
      %52 = arith.subf %51, %48 : vector<8x1xf32>
      %c0_36 = arith.constant 0 : index
      %c0_37 = arith.constant 0 : index
      %53 = vector.load %arg7[%c0_36, %c0_37] : memref<8x1xf32, #tpu.memory_space<vmem>>, vector<8x1xf32>
      %cst_38 = arith.constant 3.200000e+01 : f32
      %54 = vector.broadcast %cst_38 : f32 to vector<8x1xf32>
      %55 = arith.mulf %54, %48 : vector<8x1xf32>
      %56 = arith.subf %53, %55 : vector<8x1xf32>
      %57 = arith.subf %56, %50 : vector<8x1xf32>
      %58 = arith.subf %57, %52 : vector<8x1xf32>
      %cst_39 = arith.constant 0.00333333341 : f32
      %59 = vector.broadcast %cst_39 : f32 to vector<8x1xf32>
      %60 = arith.mulf %59, %58 : vector<8x1xf32>
      %cst_40 = arith.constant 0.899999976 : f32
      %61 = vector.broadcast %cst_40 : f32 to vector<8x1xf32>
      %62 = arith.mulf %61, %50 : vector<8x1xf32>
      %63 = arith.addf %60, %62 : vector<8x1xf32>
      %c0_i32_41 = arith.constant 0 : i32
      %64 = vector.broadcast %c0_i32_41 : i32 to vector<8x1xi32>
      %65 = arith.cmpi ne, %4, %64 : vector<8x1xi32>
      %cst_42 = arith.constant -0.665202737 : f32
      %66 = vector.broadcast %cst_42 : f32 to vector<8x1xf32>
      %67 = arith.subf %66, %63 : vector<8x1xf32>
      %cst_43 = arith.constant 0.000000e+00 : f32
      %68 = vector.broadcast %cst_43 : f32 to vector<8x1xf32>
      %69 = arith.select %65, %67, %68 : vector<8x1xi1>, vector<8x1xf32>
      %c0_44 = arith.constant 0 : index
      %c0_45 = arith.constant 0 : index
      %70 = vector.load %arg4[%c0_44, %c0_45] : memref<8x1xf32, #tpu.memory_space<vmem>>, vector<8x1xf32>
      tpu.vector_store %arg4[%c0_44, %c0_45], %69 {strides = array<i32>} : memref<8x1xf32, #tpu.memory_space<vmem>>, vector<8x1xf32>,
    } else {
    }
    return
  }
  func.func @transform_0(%arg0: i32, %arg1: i32) -> (i32, i32) {
    %c0_i32 = arith.constant 0 : i32
    %c0_i32_0 = arith.constant 0 : i32
    return %arg0, %c0_i32 : i32, i32
  }
  func.func @transform_1(%arg0: i32, %arg1: i32) -> (i32, i32) {
    %c0_i32 = arith.constant 0 : i32
    return %arg0, %arg1 : i32, i32
  }
  func.func @transform_2(%arg0: i32, %arg1: i32) -> (i32, i32) {
    %c0_i32 = arith.constant 0 : i32
    %c0_i32_0 = arith.constant 0 : i32
    return %arg0, %c0_i32 : i32, i32
  }
}

</mosaic_0001>

<bundles_post_ra>
// kernel: tpu_custom_call.1
= control target key start
LH: loop header
LB: loop body
LE: loop exit
PB: predicated region body
PF: predicated region fallthrough
CT: control target
= control target key end

     0   :  { %s427_s9 = smov 0   ;;  %s429_s10 = smov 0   ;;  %s483_s0 = inlined_call_operand.vmem [shape: s32[16,1], index: 0, kind: input, shape index: {}]   ;;  %s484_s1 = inlined_call_operand.vmem [shape: f32[16,32], index: 1, kind: input, shape index: {}]   ;;  %s485_s2 = inlined_call_operand.vmem [shape: f32[16,1], index: 2, kind: output, shape index: {}]  }
   0x1   :  { %s431_s11 = smov 0  }
   0x2 LB: > { %s24_s12 = sadd.s32 1, %s403_s10  ;;  %p344_p0 = scmp.ge.s32.totalorder %s407_s11, 1  ;;  %s407_s11 = sphi %s431_s11, %s12_s11   ;;  %s403_s10 = sphi %s429_s10, %s487_s10   ;;  %s399_s9 = sphi %s427_s9, %s486_s9  }
   0x3   : > { %p26_p1 = scmp.ge.s32.totalorder %s24_s12, 2  ;;  %p137_p2 = scmp.lt.s32.totalorder %s407_s11, 3 }
   0x5   : > { %s489_s12 = smov (%p26_p1, %s24_s12), 0  ;;  %p138_p3 = pnand %p344_p0, %p137_p2 }
   0x6   : > { %p164_p4 = scmp.lt.s32.totalorder (!%p138_p3), %s399_s9, 1  ;;  %vm183_vm0 = vcmask (!%p138_p3), 7168   ;;  %v409_v0 = vmov (!%p138_p3), 0.0   ;;  %v410_v1 = vmov (!%p138_p3), -1e+30   ;;  %vm197_vm1 = vcmask (!%p138_p3), 261120  }
   0x7   : > { %141 = sbr.rel (%p138_p3) target bundleno = 490 (0x1ea), region = 28  ;;  %188 = vst.msk [vmem:[#allocation6] sm:$0xff] (!%p138_p3), %vm183_vm0, %v409_v0  ;;  %185 = vst.msk [vmem:[#allocation3] sm:$0xff] (!%p138_p3), %vm183_vm0, %v409_v0  ;;  %v411_v4 = vmov (!%p138_p3), 0   ;;  %v191_v13 = vlaneseq (!%p138_p3) }
   0x8   : > { %186 = vst.msk [vmem:[#allocation4] sm:$0xff] (!%p138_p3), %vm183_vm0, %v409_v0  ;;  %187 = vst.msk [vmem:[#allocation5] sm:$0xff] (!%p138_p3), %vm183_vm0, %v409_v0  ;;  %377 = vset.pattern.permute.xlu0 (!%p138_p3), %v411_v4  ;;  %378 = vset.pattern.permute.xlu1 (!%p138_p3), %v411_v4 }
   0x9   : > { %184 = vst.msk [vmem:[#allocation2] sm:$0xff] (!%p138_p3), %vm183_vm0, %v410_v1  ;;  %v192_v14 = vand.u32 (!%p138_p3), 127, %v191_v13 }
   0xe   : > { %s491_s9 = smov (!%p164_p4, %s399_s9), 1  ;;  %v202_v23 = vld [vmem:[#allocation3] sm:$0xff] }
   0xf   : > { %s450_s13 = sshll.u32 %s491_s9, 3  ;;  %v222_v27 = vld [vmem:[#allocation4] sm:$0xff]  ;;  %v228_v30 = vld [vmem:[#allocation5] sm:$0xff] }
  0x10   : > { %s174_s16 = scalar_lea.vmem %s484_s1, %s450_s13  ;;  %s167_s19 = scalar_lea.vmem %s483_s0, %s450_s13  ;;  %v196_v6 = vld [vmem:[#allocation2] sm:$0xff] }
  0x11   : > { %v189_v2 = vld [vmem:[%s174_s16] sm:$0xff]  ;;  %s178_s22 = scalar_lea.vmem %s485_s2, %s450_s13 }
  0x12   : > { %v198_v3 = vsel %vm197_vm1, %v189_v2, -inf  ;;  %242 = vst.msk [vmem:[#allocation6] sm:$0xff] %vm183_vm0, %v189_v2  ;;  %v190_v5 = vld [vmem:[%s167_s19] sm:$0xff]  ;;  %v223_v18 = vsel %vm197_vm1, %v189_v2, 0.0 }
  0x13   : > { %199 = vmax.xlane.f32.xlu0 %v198_v3  ;;  %230 = vperm.xlu1 %378, %v190_v5   ;;  %vm260_vm3 = vcmp.ne.s32.totalorder %v190_v5, 0 }
  0x19   : > { %v250_v40 = vld [vmem:[#allocation6] sm:$0xff] }
  0x92   : > { %v231_v15 = vpop.permute.xlu1 %230 }
  0x93   : > { %vm232_vm2 = vcmp.eq.s32.totalorder %v192_v14, %v231_v15 }
  0x94   : > { %v233_v19 = vsel %vm232_vm2, %v189_v2, 0.0 }
  0x95   : > { %v234_v20 = vsel %vm197_vm1, %v233_v19, 0.0 }
  0xa0   : > { %v200_v7 = vpop.xlane.xlu0 %199 }
  0xa1   : > { %v201_v8 = vmax.f32 %v196_v6, %v200_v7 }
  0xa3   : > { %v203_v9 = vsub.f32 %v196_v6, %v201_v8  ;;  %221 = vst.msk [vmem:[#allocation2] sm:$0xff] %vm183_vm0, %v201_v8  ;;  %209 = vperm.xlu0 %377, %v201_v8  }
  0xa5   : > { %v204_v21 = vmul.f32 1.442695, %v203_v9 }
  0xaa   : > { %v243_v36 = vld [vmem:[#allocation2] sm:$0xff] }
 0x122   : > { %v210_v10 = vpop.permute.xlu0 %209 }
 0x123   : > { %v212_v11 = vsub.f32 %v189_v2, %v210_v10 }
 0x125   : > { %v213_v12 = vmul.f32 1.442695, %v212_v11 }
 0x127   : > { %379 = vpow2.f32 %v213_v12 }
 0x128   : > { %381 = vpow2.f32 %v204_v21 }
 0x131   : > { %v380_v16 = vpop.eup %379 }
 0x132   : > { %v215_v17 = vsel %vm197_vm1, %v380_v16, 0.0  ;;  %v382_v22 = vpop.eup %381 }
 0x133   : > { %216 = vadd.xlane.f32.xlu1 %v215_v17  ;;  %v206_v24 = vmul.f32 %v382_v22, %v202_v23 }
 0x137   : > { %224 = vadd.xlane.f32.xlu1 %v223_v18 }
 0x13b   : > { %235 = vadd.xlane.f32.xlu1 %v234_v20 }
 0x1c0   : > { %v217_v25 = vpop.xlane.xlu1 %216 }
 0x1c1   : > { %v218_v26 = vadd.f32 %v217_v25, %v206_v24 }
 0x1c3   : > { %220 = vst.msk [vmem:[#allocation3] sm:$0xff] %vm183_vm0, %v218_v26 }
 0x1c4   : > { %v225_v28 = vpop.xlane.xlu1 %224 }
 0x1c5   : > { %v226_v29 = vadd.f32 %v225_v28, %v222_v27 }
 0x1c7   : > { %227 = vst.msk [vmem:[#allocation4] sm:$0xff] %vm183_vm0, %v226_v29 }
 0x1c8   : > { %v236_v31 = vpop.xlane.xlu1 %235 }
 0x1c9   : > { %v237_v32 = vadd.f32 %v236_v31, %v228_v30 }
 0x1ca   : > { %v244_v33 = vld [vmem:[#allocation3] sm:$0xff] }
 0x1cb   : > { %383 = vlog2.f32 %v244_v33  ;;  %238 = vst.msk [vmem:[#allocation5] sm:$0xff] %vm183_vm0, %v237_v32 }
 0x1ce   : > { %v252_v41 = vld [vmem:[#allocation4] sm:$0xff] }
 0x1d2   : > { %v248_v38 = vld [vmem:[#allocation5] sm:$0xff] }
 0x1d5   : > { %v384_v34 = vpop.eup %383 }
 0x1d6   : > { %v246_v35 = vmul.f32 0.6931472, %v384_v34 }
 0x1d8   : > { %v247_v37 = vadd.f32 %v246_v35, %v243_v36 }
 0x1da   : > { %v253_v39 = vmul.f32 32.0, %v247_v37  ;;  %v249_v43 = vsub.f32 %v248_v38, %v247_v37  ;;  %v251_v44 = vsub.f32 %v250_v40, %v247_v37 }
 0x1dc   : > { %v254_v42 = vsub.f32 %v252_v41, %v253_v39  ;;  %v258_v48 = vmul.f32 0.9, %v249_v43 }
 0x1de   : > { %v255_v45 = vsub.f32 %v254_v42, %v249_v43 }
 0x1e0   : > { %v256_v46 = vsub.f32 %v255_v45, %v251_v44 }
 0x1e2   : > { %v257_v47 = vmul.f32 0.0033333334, %v256_v46 }
 0x1e4   : > { %v259_v49 = vadd.f32 %v258_v48, %v257_v47 }
 0x1e6   : > { %v261_v50 = vsub.f32 -0.66520274, %v259_v49 }
 0x1e8   : > { %v262_v51 = vsel %vm260_vm3, %v261_v50, 0.0 }
 0x1e9   : > { %263 = vst.msk [vmem:[%s178_s22] sm:$0xff] %vm183_vm0, %v262_v51 }
 0x1ea PF: > { %s12_s11 = sadd.s32 1, %s407_s11   ;;  %s486_s9 = smov %s403_s10 }
 0x1eb   : > { %p9_p5 = scmp.ge.s32.totalorder %s12_s11, 4   ;;  %s487_s10 = smov %s489_s12 }
 0x1ed   :  { %11 = sbr.rel (!%p9_p5) target bundleno = 2 (0x2), region = 69 }

</bundles_post_ra>
